<compile_context>
chip_gen: v7x
topology: tpu7x:2x2x1
jax: 0.10.0
libtpu: 0.0.40
codegen_flags: <defaults>
</compile_context>

<pallas_src>
import functools
import math

import jax
import jax.numpy as jnp
from jax.experimental import pallas as pl


# ----------------------------------------------------------------------------
# Fused Conv1d(k=5) + bias + ReLU + MaxPool1d(2) kernel (eval-BN folded into
# the weights in glue).  Single invocation: the whole (tiny) batch lives in
# VMEM and an unrolled Python loop walks batch elements.  The input is
# pre-split (in glue) into even/odd time streams so every in-kernel access is
# a contiguous static slice; the 5-tap conv becomes ONE K-stacked matmul per
# parity stream (K = 5*C_in) when C_in is lane-aligned, else 5 small matmuls.
# ----------------------------------------------------------------------------
def _conv_block_kernel(xe_ref, xo_ref, w_ref, b_ref, o_ref, *, L_out, B, C_in):
    w2d = w_ref[...]                       # (5*C_in, C_out), tap-major rows
    bias = b_ref[...]                      # (1, C_out)
    C_out = w2d.shape[-1]

    for b in range(B):                     # B is tiny; unrolled at trace time
        xe = xe_ref[b]                     # (Le, C_in) even time stream
        xo = xo_ref[b]                     # (Lo, C_in) odd time stream
        # conv[2t]   = sum_k x[2t+k]   w[k]   (even output positions)
        # conv[2t+1] = sum_k x[2t+1+k] w[k]   (odd output positions)
        taps_e = [xe[0:L_out], xo[0:L_out], xe[1:1 + L_out],
                  xo[1:1 + L_out], xe[2:2 + L_out]]
        taps_o = [xo[0:L_out], xe[1:1 + L_out], xo[1:1 + L_out],
                  xe[2:2 + L_out], xo[2:2 + L_out]]

        if C_in % 128 == 0:
            # K-stacked: one MXU pass per parity stream (K = 5*C_in).
            acc_e = jnp.dot(jnp.concatenate(taps_e, axis=-1), w2d,
                            preferred_element_type=jnp.float32)
            acc_o = jnp.dot(jnp.concatenate(taps_o, axis=-1), w2d,
                            preferred_element_type=jnp.float32)
        else:
            # First block (C_in = n_mels, lane-unaligned): 5 small matmuls.
            acc_e = jnp.zeros((L_out, C_out), jnp.float32)
            acc_o = jnp.zeros((L_out, C_out), jnp.float32)
            for k in range(5):
                wk = w2d[k * C_in:(k + 1) * C_in, :]
                acc_e = acc_e + jnp.dot(taps_e[k], wk,
                                        preferred_element_type=jnp.float32)
                acc_o = acc_o + jnp.dot(taps_o[k], wk,
                                        preferred_element_type=jnp.float32)

        acc_e = jnp.maximum(acc_e + bias, 0.0)       # bias + ReLU
        acc_o = jnp.maximum(acc_o + bias, 0.0)
        o_ref[b] = jnp.maximum(acc_e, acc_o)         # MaxPool1d(2)


def conv_block(x, w_stacked, b):
    """x: (B, L_in, C_in) channel-last.  w_stacked: (5*C_in, C_out).
    Returns (B, L_out, C_out) with L_out = (L_in - 4) // 2."""
    B, L_in, C_in = x.shape
    C_out = w_stacked.shape[-1]
    L_out = (L_in - 4) // 2

    xe = x[:, 0::2, :]                     # glue: even time stream
    xo = x[:, 1::2, :]                     # glue: odd time stream

    kernel = functools.partial(_conv_block_kernel, L_out=L_out, B=B, C_in=C_in)
    # No grid: single invocation, whole (tiny) arrays resident in VMEM.
    # TODO(synk): for production sequence lengths, tile the time axis with a
    # 4-sample halo (grid over time) to bound VMEM.
    return pl.pallas_call(
        kernel,
        out_shape=jax.ShapeDtypeStruct((B, L_out, C_out), jnp.float32),
    )(xe, xo, w_stacked, b.reshape(1, C_out))


# ----------------------------------------------------------------------------
# Fused LSTM (PyTorch gate order i,f,g,o) + time-mean + FC head.
#  * Input projection is hoisted out of the recurrence: one (T*B, H_in)@(H_in,
#    4H) matmul; only h @ W_hh stays inside the time loop.
#  * h/c live in vregs (no VMEM scratch, no per-step grid overhead).
#  * Eval-mode Dropout is identity, so mean-over-time commutes with the affine
#    Linear->Linear stack: the two FC matmuls run exactly once on mean(h_t).
# ----------------------------------------------------------------------------
def _lstm_fc_kernel(x_ref, wih_ref, whh_ref, b_ref, w1_ref, b1_ref, w2_ref,
                    b2_ref, o_ref, *, T, B, H):
    xproj = (jnp.dot(x_ref[...], wih_ref[...],
                     preferred_element_type=jnp.float32) + b_ref[...])
    whh = whh_ref[...]

    h = jnp.zeros((B, H), jnp.float32)
    c = jnp.zeros((B, H), jnp.float32)
    h_sum = jnp.zeros((B, H), jnp.float32)

    # TODO(synk): for long sequences switch to lax.fori_loop and time-tile
    # xproj; T is tiny here so a fully unrolled loop is best for the scheduler.
    for t in range(T):
        z = xproj[t * B:(t + 1) * B, :] + jnp.dot(
            h, whh, preferred_element_type=jnp.float32)
        i = jax.nn.sigmoid(z[:, 0:H])
        f = jax.nn.sigmoid(z[:, H:2 * H])
        g = jnp.tanh(z[:, 2 * H:3 * H])
        o = jax.nn.sigmoid(z[:, 3 * H:4 * H])
        c = f * c + i * g
        h = o * jnp.tanh(c)
        h_sum = h_sum + h

    h_mean = h_sum * (1.0 / T)
    y1 = jnp.dot(h_mean, w1_ref[...],
                 preferred_element_type=jnp.float32) + b1_ref[...]
    o_ref[...] = jnp.dot(y1, w2_ref[...],
                         preferred_element_type=jnp.float32) + b2_ref[...]


def lstm_fc_mean(x_flat, wih, whh, b, w1, b1, w2, b2, *, T, B):
    H = whh.shape[0]
    n_lin = w1.shape[1]
    n_lbls = w2.shape[1]
    kernel = functools.partial(_lstm_fc_kernel, T=T, B=B, H=H)
    return pl.pallas_call(
        kernel,
        out_shape=jax.ShapeDtypeStruct((B, n_lbls), jnp.float32),
    )(x_flat, wih, whh, b, w1, b1.reshape(1, n_lin), w2, b2.reshape(1, n_lbls))


# ----------------------------------------------------------------------------
# Parameter init (deterministic, mirrors the PyTorch module's shapes/init).
# ----------------------------------------------------------------------------
def init_params(key, n_mels, n_lbls, n_filter=256, n_hidden=256, n_linear=256):
    gain = math.sqrt(2.0)                  # nn.init.calculate_gain('relu')
    keys = list(jax.random.split(key, 16))
    kit = iter(keys)

    def xavier(shape, fan_in, fan_out):
        std = gain * math.sqrt(2.0 / (fan_in + fan_out))
        return (std * jax.random.normal(next(kit), shape)).astype(jnp.float32)

    def uniform_bias(shape, fan_in):
        bound = 1.0 / math.sqrt(fan_in)
        return jax.random.uniform(next(kit), shape, jnp.float32, -bound, bound)

    def bn_eval(c, eps=1e-5):
        gamma = jnp.ones((c,), jnp.float32)
        beta = jnp.zeros((c,), jnp.float32)
        mean = jnp.zeros((c,), jnp.float32)
        var = jnp.ones((c,), jnp.float32)
        scale = gamma / jnp.sqrt(var + eps)
        shift = beta - mean * scale
        return scale, shift

    params = {"bn0": bn_eval(n_mels)}

    conv_blocks = []
    cin = n_mels
    for _ in range(3):
        w = xavier((5, cin, n_filter), fan_in=cin * 5, fan_out=n_filter * 5)
        b = uniform_bias((n_filter,), cin * 5)
        s, t = bn_eval(n_filter)
        conv_blocks.append((w, b, s, t))
        cin = n_filter
    params["conv_blocks"] = conv_blocks

    # LSTM weights stored transposed: (in, 4H) / (H, 4H); gate order i, f, g, o.
    wih_t = xavier((n_filter, 4 * n_hidden), n_filter, 4 * n_hidden)
    whh_t = xavier((n_hidden, 4 * n_hidden), n_hidden, 4 * n_hidden)
    b_ih = uniform_bias((4 * n_hidden,), n_hidden)
    b_hh = uniform_bias((4 * n_hidden,), n_hidden)
    params["lstm"] = (wih_t, whh_t, (b_ih + b_hh).reshape(1, 4 * n_hidden))

    w1 = xavier((n_hidden, n_linear), n_hidden, n_linear)
    b1 = uniform_bias((n_linear,), n_hidden)
    w2 = xavier((n_linear, n_lbls), n_linear, n_lbls)
    b2 = uniform_bias((n_lbls,), n_linear)
    params["fc"] = (w1, b1, w2, b2)
    return params


# ----------------------------------------------------------------------------
# Full forward pass (Pallas path).  Every eval-mode BN affine is folded into
# the following layer's weights/bias in glue (exact in eval mode).
# ----------------------------------------------------------------------------
def model_forward(x, params):
    # x: (B, n_mels, n_samp) — PyTorch NCL input.
    s0, t0 = params["bn0"]
    prev_s, prev_t = s0, t0

    folded = []
    for (w, b, s, t) in params["conv_blocks"]:
        wf = w * prev_s[None, :, None]                     # fold prev BN scale
        bf = b + jnp.einsum("kco,c->o", w, prev_t)         # fold prev BN shift
        folded.append((jnp.reshape(wf, (-1, wf.shape[-1])), bf))  # (5*Cin, Cout)
        prev_s, prev_t = s, t                              # this block's BN ->
                                                           # fold into next layer

    y = jnp.transpose(x, (0, 2, 1))        # (B, L, C) channel-last
    for (wk, bk) in folded:
        y = conv_block(y, wk, bk)          # fused conv+bias+ReLU+pool kernel

    # (B, T, C) -> time-major (T*B, C) rows for the hoisted LSTM projection.
    # Negligible at these sizes (8 KiB); see TODO in conv_block for big L.
    B_, T_, C_ = y.shape
    x_flat = jnp.transpose(y, (1, 0, 2)).reshape(T_ * B_, C_)

    wih_t, whh_t, bsum = params["lstm"]
    # Fold the last block's BN into the LSTM input projection.
    wih_f = wih_t * prev_s[:, None]
    b_f = bsum + (prev_t @ wih_t)[None, :]

    w1, b1, w2, b2 = params["fc"]
    return lstm_fc_mean(x_flat, wih_f, whh_t, b_f, w1, b1, w2, b2, T=T_, B=B_)


# ----------------------------------------------------------------------------
# Pure-JAX reference (same eval-mode semantics) for a sanity check.
# ----------------------------------------------------------------------------
def reference_forward(x, params):
    s0, t0 = params["bn0"]
    y = x * s0[None, :, None] + t0[None, :, None]
    y = jnp.transpose(y, (0, 2, 1))
    for (w, b, s, t) in params["conv_blocks"]:
        B, L, _ = y.shape
        Lc = L - 4
        Cout = w.shape[-1]
        acc = jnp.zeros((B, Lc, Cout), jnp.float32)
        for k in range(5):
            acc = acc + jnp.einsum("blc,co->blo", y[:, k:k + Lc, :], w[k])
        acc = jnp.maximum(acc + b[None, None, :], 0.0)
        Lo = Lc // 2
        acc = jnp.maximum(acc[:, 0:2 * Lo:2, :], acc[:, 1:2 * Lo:2, :])
        y = acc * s[None, None, :] + t[None, None, :]
    h_seq = jnp.transpose(y, (1, 0, 2))
    wih_t, whh_t, bsum = params["lstm"]
    H = whh_t.shape[0]
    T, B, _ = h_seq.shape
    h = jnp.zeros((B, H), jnp.float32)
    c = jnp.zeros((B, H), jnp.float32)
    outs = []
    for tstep in range(T):
        z = h_seq[tstep] @ wih_t + h @ whh_t + bsum
        i = jax.nn.sigmoid(z[:, :H])
        f = jax.nn.sigmoid(z[:, H:2 * H])
        g = jnp.tanh(z[:, 2 * H:3 * H])
        o = jax.nn.sigmoid(z[:, 3 * H:])
        c = f * c + i * g
        h = o * jnp.tanh(c)
        outs.append(h)
    hs = jnp.stack(outs)                   # (T, B, H)
    w1, b1, w2, b2 = params["fc"]
    yy = (hs @ w1 + b1) @ w2 + b2          # (T, B, n_lbls)
    return jnp.mean(yy, axis=0)            # == permute(1,2,0).mean(-1)


if __name__ == "__main__":
    # Small shapes: batch=2, n_mels=16, n_samp=64, n_lbls=8 (hidden sizes are
    # fixed at 256 by the module definition).
    B, n_mels, n_samp, n_lbls = 2, 16, 64, 8
    params = init_params(jax.random.PRNGKey(0), n_mels, n_lbls)
    x = jax.random.normal(jax.random.PRNGKey(42), (B, n_mels, n_samp),
                          dtype=jnp.float32)

    out = jax.block_until_ready(model_forward(x, params))
    assert out.shape == (B, n_lbls), out.shape

    ref = jax.block_until_ready(reference_forward(x, params))
    err = float(jnp.max(jnp.abs(out - ref)))
    assert err < 5e-2, f"mismatch vs reference: {err}"

    # TODO(synk): training-mode BatchNorm (batch statistics) and stochastic
    # Dropout are not implemented; eval-mode semantics are used.
    print("KERNEL_OK")
</pallas_src>

<mosaic_0001>
module attributes {stable_mosaic.version = 11 : i64} {
  func.func @_conv_block_kernel(%arg0: memref<2x32x16xf32, #tpu.memory_space<vmem>>, %arg1: memref<2x32x16xf32, #tpu.memory_space<vmem>>, %arg2: memref<80x256xf32, #tpu.memory_space<vmem>>, %arg3: memref<1x256xf32, #tpu.memory_space<vmem>>, %arg4: memref<2x30x256xf32, #tpu.memory_space<vmem>>) attributes {dimension_semantics = [], scalar_prefetch = 0 : i64, scratch_operands = 0 : i64, tpu.core_type = #tpu.core_type<tc>} {
    %c0 = arith.constant 0 : index
    %c0_0 = arith.constant 0 : index
    %0 = vector.load %arg2[%c0, %c0_0] : memref<80x256xf32, #tpu.memory_space<vmem>>, vector<80x256xf32>
    %c0_1 = arith.constant 0 : index
    %c0_2 = arith.constant 0 : index
    %1 = vector.load %arg3[%c0_1, %c0_2] : memref<1x256xf32, #tpu.memory_space<vmem>>, vector<1x256xf32>
    %c0_3 = arith.constant 0 : index
    %c0_4 = arith.constant 0 : index
    %c0_5 = arith.constant 0 : index
    %2 = vector.load %arg0[%c0_3, %c0_4, %c0_5] : memref<2x32x16xf32, #tpu.memory_space<vmem>>, vector<1x32x16xf32>
    %3 = vector.shape_cast %2 : vector<1x32x16xf32> to vector<32x16xf32>
    %c0_6 = arith.constant 0 : index
    %c0_7 = arith.constant 0 : index
    %c0_8 = arith.constant 0 : index
    %4 = vector.load %arg1[%c0_6, %c0_7, %c0_8] : memref<2x32x16xf32, #tpu.memory_space<vmem>>, vector<1x32x16xf32>
    %5 = vector.shape_cast %4 : vector<1x32x16xf32> to vector<32x16xf32>
    %6 = vector.extract_strided_slice %3 {offsets = [0, 0], sizes = [30, 16], strides = [1, 1]} : vector<32x16xf32> to vector<30x16xf32>
    %7 = vector.extract_strided_slice %5 {offsets = [0, 0], sizes = [30, 16], strides = [1, 1]} : vector<32x16xf32> to vector<30x16xf32>
    %8 = vector.extract_strided_slice %3 {offsets = [1, 0], sizes = [30, 16], strides = [1, 1]} : vector<32x16xf32> to vector<30x16xf32>
    %9 = vector.extract_strided_slice %5 {offsets = [1, 0], sizes = [30, 16], strides = [1, 1]} : vector<32x16xf32> to vector<30x16xf32>
    %10 = vector.extract_strided_slice %3 {offsets = [2, 0], sizes = [30, 16], strides = [1, 1]} : vector<32x16xf32> to vector<30x16xf32>
    %11 = vector.extract_strided_slice %5 {offsets = [0, 0], sizes = [30, 16], strides = [1, 1]} : vector<32x16xf32> to vector<30x16xf32>
    %12 = vector.extract_strided_slice %3 {offsets = [1, 0], sizes = [30, 16], strides = [1, 1]} : vector<32x16xf32> to vector<30x16xf32>
    %13 = vector.extract_strided_slice %5 {offsets = [1, 0], sizes = [30, 16], strides = [1, 1]} : vector<32x16xf32> to vector<30x16xf32>
    %14 = vector.extract_strided_slice %3 {offsets = [2, 0], sizes = [30, 16], strides = [1, 1]} : vector<32x16xf32> to vector<30x16xf32>
    %15 = vector.extract_strided_slice %5 {offsets = [2, 0], sizes = [30, 16], strides = [1, 1]} : vector<32x16xf32> to vector<30x16xf32>
    %cst = arith.constant 0.000000e+00 : f32
    %16 = vector.broadcast %cst : f32 to vector<30x256xf32>
    %cst_9 = arith.constant 0.000000e+00 : f32
    %17 = vector.broadcast %cst_9 : f32 to vector<30x256xf32>
    %18 = vector.extract_strided_slice %0 {offsets = [0, 0], sizes = [16, 256], strides = [1, 1]} : vector<80x256xf32> to vector<16x256xf32>
    %cst_10 = arith.constant dense<0.000000e+00> : vector<30x256xf32>
    %19 = tpu.matmul %6, %18, %cst_10 {dimension_numbers = #tpu.dot_dimension_numbers<[1], [0], [0], [1], [0, 0, 1, 1], [], []>} : vector<30x16xf32>, vector<16x256xf32>, vector<30x256xf32> -> vector<30x256xf32>
    %20 = arith.addf %16, %19 : vector<30x256xf32>
    %cst_11 = arith.constant dense<0.000000e+00> : vector<30x256xf32>
    %21 = tpu.matmul %11, %18, %cst_11 {dimension_numbers = #tpu.dot_dimension_numbers<[1], [0], [0], [1], [0, 0, 1, 1], [], []>} : vector<30x16xf32>, vector<16x256xf32>, vector<30x256xf32> -> vector<30x256xf32>
    %22 = arith.addf %17, %21 : vector<30x256xf32>
    %23 = vector.extract_strided_slice %0 {offsets = [16, 0], sizes = [16, 256], strides = [1, 1]} : vector<80x256xf32> to vector<16x256xf32>
    %cst_12 = arith.constant dense<0.000000e+00> : vector<30x256xf32>
    %24 = tpu.matmul %7, %23, %cst_12 {dimension_numbers = #tpu.dot_dimension_numbers<[1], [0], [0], [1], [0, 0, 1, 1], [], []>} : vector<30x16xf32>, vector<16x256xf32>, vector<30x256xf32> -> vector<30x256xf32>
    %25 = arith.addf %20, %24 : vector<30x256xf32>
    %cst_13 = arith.constant dense<0.000000e+00> : vector<30x256xf32>
    %26 = tpu.matmul %12, %23, %cst_13 {dimension_numbers = #tpu.dot_dimension_numbers<[1], [0], [0], [1], [0, 0, 1, 1], [], []>} : vector<30x16xf32>, vector<16x256xf32>, vector<30x256xf32> -> vector<30x256xf32>
    %27 = arith.addf %22, %26 : vector<30x256xf32>
    %28 = vector.extract_strided_slice %0 {offsets = [32, 0], sizes = [16, 256], strides = [1, 1]} : vector<80x256xf32> to vector<16x256xf32>
    %cst_14 = arith.constant dense<0.000000e+00> : vector<30x256xf32>
    %29 = tpu.matmul %8, %28, %cst_14 {dimension_numbers = #tpu.dot_dimension_numbers<[1], [0], [0], [1], [0, 0, 1, 1], [], []>} : vector<30x16xf32>, vector<16x256xf32>, vector<30x256xf32> -> vector<30x256xf32>
    %30 = arith.addf %25, %29 : vector<30x256xf32>
    %cst_15 = arith.constant dense<0.000000e+00> : vector<30x256xf32>
    %31 = tpu.matmul %13, %28, %cst_15 {dimension_numbers = #tpu.dot_dimension_numbers<[1], [0], [0], [1], [0, 0, 1, 1], [], []>} : vector<30x16xf32>, vector<16x256xf32>, vector<30x256xf32> -> vector<30x256xf32>
    %32 = arith.addf %27, %31 : vector<30x256xf32>
    %33 = vector.extract_strided_slice %0 {offsets = [48, 0], sizes = [16, 256], strides = [1, 1]} : vector<80x256xf32> to vector<16x256xf32>
    %cst_16 = arith.constant dense<0.000000e+00> : vector<30x256xf32>
    %34 = tpu.matmul %9, %33, %cst_16 {dimension_numbers = #tpu.dot_dimension_numbers<[1], [0], [0], [1], [0, 0, 1, 1], [], []>} : vector<30x16xf32>, vector<16x256xf32>, vector<30x256xf32> -> vector<30x256xf32>
    %35 = arith.addf %30, %34 : vector<30x256xf32>
    %cst_17 = arith.constant dense<0.000000e+00> : vector<30x256xf32>
    %36 = tpu.matmul %14, %33, %cst_17 {dimension_numbers = #tpu.dot_dimension_numbers<[1], [0], [0], [1], [0, 0, 1, 1], [], []>} : vector<30x16xf32>, vector<16x256xf32>, vector<30x256xf32> -> vector<30x256xf32>
    %37 = arith.addf %32, %36 : vector<30x256xf32>
    %38 = vector.extract_strided_slice %0 {offsets = [64, 0], sizes = [16, 256], strides = [1, 1]} : vector<80x256xf32> to vector<16x256xf32>
    %cst_18 = arith.constant dense<0.000000e+00> : vector<30x256xf32>
    %39 = tpu.matmul %10, %38, %cst_18 {dimension_numbers = #tpu.dot_dimension_numbers<[1], [0], [0], [1], [0, 0, 1, 1], [], []>} : vector<30x16xf32>, vector<16x256xf32>, vector<30x256xf32> -> vector<30x256xf32>
    %40 = arith.addf %35, %39 : vector<30x256xf32>
    %cst_19 = arith.constant dense<0.000000e+00> : vector<30x256xf32>
    %41 = tpu.matmul %15, %38, %cst_19 {dimension_numbers = #tpu.dot_dimension_numbers<[1], [0], [0], [1], [0, 0, 1, 1], [], []>} : vector<30x16xf32>, vector<16x256xf32>, vector<30x256xf32> -> vector<30x256xf32>
    %42 = arith.addf %37, %41 : vector<30x256xf32>
    %43 = vector.broadcast %1 : vector<1x256xf32> to vector<30x256xf32>
    %44 = arith.addf %40, %43 : vector<30x256xf32>
    %cst_20 = arith.constant 0.000000e+00 : f32
    %45 = vector.broadcast %cst_20 : f32 to vector<30x256xf32>
    %46 = arith.maximumf %44, %45 : vector<30x256xf32>
    %47 = vector.broadcast %1 : vector<1x256xf32> to vector<30x256xf32>
    %48 = arith.addf %42, %47 : vector<30x256xf32>
    %cst_21 = arith.constant 0.000000e+00 : f32
    %49 = vector.broadcast %cst_21 : f32 to vector<30x256xf32>
    %50 = arith.maximumf %48, %49 : vector<30x256xf32>
    %51 = arith.maximumf %46, %50 : vector<30x256xf32>
    %c0_22 = arith.constant 0 : index
    %c0_23 = arith.constant 0 : index
    %c0_24 = arith.constant 0 : index
    %52 = vector.load %arg4[%c0_22, %c0_23, %c0_24] : memref<2x30x256xf32, #tpu.memory_space<vmem>>, vector<1x30x256xf32>
    %53 = vector.shape_cast %52 : vector<1x30x256xf32> to vector<30x256xf32>
    %54 = vector.shape_cast %51 : vector<30x256xf32> to vector<1x30x256xf32>
    tpu.vector_store %arg4[%c0_22, %c0_23, %c0_24], %54 {strides = array<i32>} : memref<2x30x256xf32, #tpu.memory_space<vmem>>, vector<1x30x256xf32>,
    %c1 = arith.constant 1 : index
    %c0_25 = arith.constant 0 : index
    %c0_26 = arith.constant 0 : index
    %55 = vector.load %arg0[%c1, %c0_25, %c0_26] : memref<2x32x16xf32, #tpu.memory_space<vmem>>, vector<1x32x16xf32>
    %56 = vector.shape_cast %55 : vector<1x32x16xf32> to vector<32x16xf32>
    %c1_27 = arith.constant 1 : index
    %c0_28 = arith.constant 0 : index
    %c0_29 = arith.constant 0 : index
    %57 = vector.load %arg1[%c1_27, %c0_28, %c0_29] : memref<2x32x16xf32, #tpu.memory_space<vmem>>, vector<1x32x16xf32>
    %58 = vector.shape_cast %57 : vector<1x32x16xf32> to vector<32x16xf32>
    %59 = vector.extract_strided_slice %56 {offsets = [0, 0], sizes = [30, 16], strides = [1, 1]} : vector<32x16xf32> to vector<30x16xf32>
    %60 = vector.extract_strided_slice %58 {offsets = [0, 0], sizes = [30, 16], strides = [1, 1]} : vector<32x16xf32> to vector<30x16xf32>
    %61 = vector.extract_strided_slice %56 {offsets = [1, 0], sizes = [30, 16], strides = [1, 1]} : vector<32x16xf32> to vector<30x16xf32>
    %62 = vector.extract_strided_slice %58 {offsets = [1, 0], sizes = [30, 16], strides = [1, 1]} : vector<32x16xf32> to vector<30x16xf32>
    %63 = vector.extract_strided_slice %56 {offsets = [2, 0], sizes = [30, 16], strides = [1, 1]} : vector<32x16xf32> to vector<30x16xf32>
    %64 = vector.extract_strided_slice %58 {offsets = [0, 0], sizes = [30, 16], strides = [1, 1]} : vector<32x16xf32> to vector<30x16xf32>
    %65 = vector.extract_strided_slice %56 {offsets = [1, 0], sizes = [30, 16], strides = [1, 1]} : vector<32x16xf32> to vector<30x16xf32>
    %66 = vector.extract_strided_slice %58 {offsets = [1, 0], sizes = [30, 16], strides = [1, 1]} : vector<32x16xf32> to vector<30x16xf32>
    %67 = vector.extract_strided_slice %56 {offsets = [2, 0], sizes = [30, 16], strides = [1, 1]} : vector<32x16xf32> to vector<30x16xf32>
    %68 = vector.extract_strided_slice %58 {offsets = [2, 0], sizes = [30, 16], strides = [1, 1]} : vector<32x16xf32> to vector<30x16xf32>
    %cst_30 = arith.constant 0.000000e+00 : f32
    %69 = vector.broadcast %cst_30 : f32 to vector<30x256xf32>
    %cst_31 = arith.constant 0.000000e+00 : f32
    %70 = vector.broadcast %cst_31 : f32 to vector<30x256xf32>
    %71 = vector.extract_strided_slice %0 {offsets = [0, 0], sizes = [16, 256], strides = [1, 1]} : vector<80x256xf32> to vector<16x256xf32>
    %cst_32 = arith.constant dense<0.000000e+00> : vector<30x256xf32>
    %72 = tpu.matmul %59, %71, %cst_32 {dimension_numbers = #tpu.dot_dimension_numbers<[1], [0], [0], [1], [0, 0, 1, 1], [], []>} : vector<30x16xf32>, vector<16x256xf32>, vector<30x256xf32> -> vector<30x256xf32>
    %73 = arith.addf %69, %72 : vector<30x256xf32>
    %cst_33 = arith.constant dense<0.000000e+00> : vector<30x256xf32>
    %74 = tpu.matmul %64, %71, %cst_33 {dimension_numbers = #tpu.dot_dimension_numbers<[1], [0], [0], [1], [0, 0, 1, 1], [], []>} : vector<30x16xf32>, vector<16x256xf32>, vector<30x256xf32> -> vector<30x256xf32>
    %75 = arith.addf %70, %74 : vector<30x256xf32>
    %76 = vector.extract_strided_slice %0 {offsets = [16, 0], sizes = [16, 256], strides = [1, 1]} : vector<80x256xf32> to vector<16x256xf32>
    %cst_34 = arith.constant dense<0.000000e+00> : vector<30x256xf32>
    %77 = tpu.matmul %60, %76, %cst_34 {dimension_numbers = #tpu.dot_dimension_numbers<[1], [0], [0], [1], [0, 0, 1, 1], [], []>} : vector<30x16xf32>, vector<16x256xf32>, vector<30x256xf32> -> vector<30x256xf32>
    %78 = arith.addf %73, %77 : vector<30x256xf32>
    %cst_35 = arith.constant dense<0.000000e+00> : vector<30x256xf32>
    %79 = tpu.matmul %65, %76, %cst_35 {dimension_numbers = #tpu.dot_dimension_numbers<[1], [0], [0], [1], [0, 0, 1, 1], [], []>} : vector<30x16xf32>, vector<16x256xf32>, vector<30x256xf32> -> vector<30x256xf32>
    %80 = arith.addf %75, %79 : vector<30x256xf32>
    %81 = vector.extract_strided_slice %0 {offsets = [32, 0], sizes = [16, 256], strides = [1, 1]} : vector<80x256xf32> to vector<16x256xf32>
    %cst_36 = arith.constant dense<0.000000e+00> : vector<30x256xf32>
    %82 = tpu.matmul %61, %81, %cst_36 {dimension_numbers = #tpu.dot_dimension_numbers<[1], [0], [0], [1], [0, 0, 1, 1], [], []>} : vector<30x16xf32>, vector<16x256xf32>, vector<30x256xf32> -> vector<30x256xf32>
    %83 = arith.addf %78, %82 : vector<30x256xf32>
    %cst_37 = arith.constant dense<0.000000e+00> : vector<30x256xf32>
    %84 = tpu.matmul %66, %81, %cst_37 {dimension_numbers = #tpu.dot_dimension_numbers<[1], [0], [0], [1], [0, 0, 1, 1], [], []>} : vector<30x16xf32>, vector<16x256xf32>, vector<30x256xf32> -> vector<30x256xf32>
    %85 = arith.addf %80, %84 : vector<30x256xf32>
    %86 = vector.extract_strided_slice %0 {offsets = [48, 0], sizes = [16, 256], strides = [1, 1]} : vector<80x256xf32> to vector<16x256xf32>
    %cst_38 = arith.constant dense<0.000000e+00> : vector<30x256xf32>
    %87 = tpu.matmul %62, %86, %cst_38 {dimension_numbers = #tpu.dot_dimension_numbers<[1], [0], [0], [1], [0, 0, 1, 1], [], []>} : vector<30x16xf32>, vector<16x256xf32>, vector<30x256xf32> -> vector<30x256xf32>
    %88 = arith.addf %83, %87 : vector<30x256xf32>
    %cst_39 = arith.constant dense<0.000000e+00> : vector<30x256xf32>
    %89 = tpu.matmul %67, %86, %cst_39 {dimension_numbers = #tpu.dot_dimension_numbers<[1], [0], [0], [1], [0, 0, 1, 1], [], []>} : vector<30x16xf32>, vector<16x256xf32>, vector<30x256xf32> -> vector<30x256xf32>
    %90 = arith.addf %85, %89 : vector<30x256xf32>
    %91 = vector.extract_strided_slice %0 {offsets = [64, 0], sizes = [16, 256], strides = [1, 1]} : vector<80x256xf32> to vector<16x256xf32>
    %cst_40 = arith.constant dense<0.000000e+00> : vector<30x256xf32>
    %92 = tpu.matmul %63, %91, %cst_40 {dimension_numbers = #tpu.dot_dimension_numbers<[1], [0], [0], [1], [0, 0, 1, 1], [], []>} : vector<30x16xf32>, vector<16x256xf32>, vector<30x256xf32> -> vector<30x256xf32>
    %93 = arith.addf %88, %92 : vector<30x256xf32>
    %cst_41 = arith.constant dense<0.000000e+00> : vector<30x256xf32>
    %94 = tpu.matmul %68, %91, %cst_41 {dimension_numbers = #tpu.dot_dimension_numbers<[1], [0], [0], [1], [0, 0, 1, 1], [], []>} : vector<30x16xf32>, vector<16x256xf32>, vector<30x256xf32> -> vector<30x256xf32>
    %95 = arith.addf %90, %94 : vector<30x256xf32>
    %96 = vector.broadcast %1 : vector<1x256xf32> to vector<30x256xf32>
    %97 = arith.addf %93, %96 : vector<30x256xf32>
    %cst_42 = arith.constant 0.000000e+00 : f32
    %98 = vector.broadcast %cst_42 : f32 to vector<30x256xf32>
    %99 = arith.maximumf %97, %98 : vector<30x256xf32>
    %100 = vector.broadcast %1 : vector<1x256xf32> to vector<30x256xf32>
    %101 = arith.addf %95, %100 : vector<30x256xf32>
    %cst_43 = arith.constant 0.000000e+00 : f32
    %102 = vector.broadcast %cst_43 : f32 to vector<30x256xf32>
    %103 = arith.maximumf %101, %102 : vector<30x256xf32>
    %104 = arith.maximumf %99, %103 : vector<30x256xf32>
    %c1_44 = arith.constant 1 : index
    %c0_45 = arith.constant 0 : index
    %c0_46 = arith.constant 0 : index
    %105 = vector.load %arg4[%c1_44, %c0_45, %c0_46] : memref<2x30x256xf32, #tpu.memory_space<vmem>>, vector<1x30x256xf32>
    %106 = vector.shape_cast %105 : vector<1x30x256xf32> to vector<30x256xf32>
    %107 = vector.shape_cast %104 : vector<30x256xf32> to vector<1x30x256xf32>
    tpu.vector_store %arg4[%c1_44, %c0_45, %c0_46], %107 {strides = array<i32>} : memref<2x30x256xf32, #tpu.memory_space<vmem>>, vector<1x30x256xf32>,
    return
  }
}

</mosaic_0001>

<bundles_post_ra>
// kernel: tpu_custom_call.1
= control target key start
LH: loop header
LB: loop body
LE: loop exit
PB: predicated region body
PF: predicated region fallthrough
CT: control target
= control target key end

     0   :  { %v2520_v3 = vmov 0.0   ;;  %vm249_vm0 = vcmask 1046528   ;;  %vm46_vm1 = vcmask 130048   ;;  %vm749_vm2 = vcmask 1045504   ;;  %s3154_s2 = inlined_call_operand.vmem [shape: f32[80,256], index: 2, kind: input, shape index: {}]   ;;  %s3155_s0 = inlined_call_operand.vmem [shape: f32[2,32,16], index: 0, kind: input, shape index: {}]   ;;  %s3156_s1 = inlined_call_operand.vmem [shape: f32[2,32,16], index: 1, kind: input, shape index: {}]   ;;  %s3157_s3 = inlined_call_operand.vmem [shape: f32[1,256], index: 3, kind: input, shape index: {}]   ;;  %s3158_s4 = inlined_call_operand.vmem [shape: f32[2,30,256], index: 4, kind: output, shape index: {}]  }
   0x1   :  { %v22_v0 = vld [vmem:[%s3154_s2 + $0x28] sm:$0xff]  ;;  %v24_v1 = vld [vmem:[%s3154_s2 + $0x38] sm:$0xff]  ;;  %v21_v2 = vld [vmem:[%s3154_s2 + $0x20] sm:$0xff]  ;;  %123 = vmatprep.mubr.f32.mxu0 %v2520_v3  ;;  %329 = vmatprep.mubr.f32.mxu1 %v2520_v3 }
   0x2   :  { %v2557_v4 = vpack.c.bf16 %v24_v1, %v22_v0  ;;  %v23_v5 = vld [vmem:[%s3154_s2 + $0x30] sm:$0xff]  ;;  %v18_v6 = vld [vmem:[%s3154_s2 + $0x8] sm:$0xff]  ;;  %v20_v8 = vld [vmem:[%s3154_s2 + $0x18] sm:$0xff] }
   0x3   :  { %v2565_v7 = vpack.c.bf16 %v23_v5, %v21_v2  ;;  %v2573_v9 = vld [vmem:[%s3155_s0] sm:$0xff]  ;;  %v2578_v10 = vld [vmem:[%s3155_s0 + $0x8] sm:$0xff]  ;;  %v2582_v11 = vpack.c.bf16 %v20_v8, %v18_v6  ;;  %v19_v15 = vld [vmem:[%s3154_s2 + $0x10] sm:$0xff] }
   0x4   :  { %2312 = vmatprep.subr.bf16.mxu0 %v2557_v4  ;;  %2320 = vmatprep.subr.bf16.mxu1 %v2557_v4  ;;  %v250_v12 = vrot.slane %v2573_v9, 1  ;;  %v251_v13 = vrot.slane %v2578_v10, 1  ;;  %v17_v14 = vld [vmem:[%s3154_s2] sm:$0xff]  ;;  %v2604_v18 = vld [vmem:[%s3155_s0 + $0x10] sm:$0xff]  ;;  %v2615_v21 = vld [vmem:[%s3155_s0 + $0x18] sm:$0xff] }
   0x5   :  { %2314 = vmatpush1.bf16.msra.mxu0 %v2565_v7  ;;  %2322 = vmatpush1.bf16.msra.mxu1 %v2565_v7  ;;  %v2597_v16 = vld [vmem:[%s3156_s1] sm:$0xff]  ;;  %v2599_v17 = vpack.c.bf16 %v19_v15, %v17_v14  ;;  %v253_v20 = vrot.slane %v2604_v18, 1  ;;  %v26_v22 = vld [vmem:[%s3154_s2 + $0x48] sm:$0xff]  ;;  %v28_v23 = vld [vmem:[%s3154_s2 + $0x58] sm:$0xff]  ;;  %v2640_v27 = vrot.slane %v2615_v21, 1 }
   0x6   :  { %2316 = vmatprep.subr.bf16.mxu0 %v2582_v11  ;;  %v2608_v19 = vsel %vm249_vm0, %v250_v12, %v251_v13  ;;  %2324 = vmatprep.subr.bf16.mxu1 %v2582_v11  ;;  %v2623_v24 = vpack.c.bf16 %v28_v23, %v26_v22  ;;  %v2634_v25 = vld [vmem:[%s3156_s1 + $0x8] sm:$0xff]  ;;  %v2647_v28 = vld [vmem:[%s3155_s0 + $0x20] sm:$0xff]  ;;  %v2664_v31 = vld [vmem:[%s3155_s0 + $0x30] sm:$0xff]  ;;  %v540_v15 = vrot.slane %v2597_v16, 1 }
   0x7   :  { %v2637_v26 = vsel %vm249_vm0, %v251_v13, %v253_v20  ;;  %v2654_v29 = vld [vmem:[%s3156_s1 + $0x20] sm:$0xff]  ;;  %v2659_v30 = vld [vmem:[%s3155_s0 + $0x28] sm:$0xff]  ;;  %v2679_v34 = vld [vmem:[%s3155_s0 + $0x38] sm:$0xff]  ;;  %v2690_v36 = vsel %vm249_vm0, %v253_v20, %v2640_v27  ;;  %v1342_v37 = vrot.slane %v2647_v28, 1  ;;  %v1345_v41 = vrot.slane %v2664_v31, 1 }
   0x8   :  { %2215 = vmatmul.mubr.msk.f32.vlgmr.msra.gmra.mrb[0].mxu0 %vm46_vm1, %v2597_v16  ;;  %2223 = vmatmul.mubr.msk.f32.vlgmr.msra.gmra.mrb[0].mxu1 %vm46_vm1, %v2608_v19  ;;  %v1632_v32 = vrot.slane %v2654_v29, 1  ;;  %v2674_v33 = vld [vmem:[%s3156_s1 + $0x28] sm:$0xff]  ;;  %v2686_v35 = vld [vmem:[%s3156_s1 + $0x10] sm:$0xff]  ;;  %v1343_v38 = vrot.slane %v2659_v30, 1  ;;  %v2705_v43 = vld [vmem:[%s3156_s1 + $0x38] sm:$0xff]  ;;  %v2711_v45 = vrot.slane %v2679_v34, 1 }
   0x9   :  { %2318 = vmatpush1.bf16.msra.mxu0 %v2599_v17  ;;  %2326 = vmatpush1.bf16.msra.mxu1 %v2599_v17  ;;  %v1633_v39 = vrot.slane %v2674_v33, 1  ;;  %v2698_v40 = vld [vmem:[%s3156_s1 + $0x30] sm:$0xff]  ;;  %v2714_v46 = vrot.slane %v2705_v43, 1  ;;  %v1841_v50 = vrot.slane %v2647_v28, 2  ;;  %v2735_v51 = vld [vmem:[%s3156_s1 + $0x18] sm:$0xff]  ;;  %v1842_v54 = vrot.slane %v2659_v30, 2 }
   0xa   :  { %129 = vmatprep.mubr.f32.mxu0 %v2520_v3  ;;  %335 = vmatprep.mubr.f32.mxu1 %v2520_v3  ;;  %v1635_v42 = vrot.slane %v2698_v40, 1  ;;  %v2708_v44 = vsel %vm249_vm0, %v1342_v37, %v1343_v38  ;;  %v2721_v47 = vsel %vm249_vm0, %v1343_v38, %v1345_v41  ;;  %v2739_v52 = vsel %vm249_vm0, %v1345_v41, %v2711_v45  ;;  %v25_v56 = vld [vmem:[%s3154_s2 + $0x40] sm:$0xff]  ;;  %v27_v57 = vld [vmem:[%s3154_s2 + $0x50] sm:$0xff]  ;;  %v30_v63 = vld [vmem:[%s3154_s2 + $0x68] sm:$0xff] }
   0xb   :  { %2328 = vmatprep.subr.bf16.mxu0 %v2623_v24  ;;  %2332 = vmatprep.subr.bf16.mxu1 %v2623_v24  ;;  %v2724_v48 = vsel %vm249_vm0, %v1632_v32, %v1633_v39  ;;  %v1844_v55 = vrot.slane %v2664_v31, 2  ;;  %v2754_v58 = vrot.slane %v2679_v34, 2  ;;  %v2050_v59 = vrot.slane %v2654_v29, 2  ;;  %v32_v0 = vld [vmem:[%s3154_s2 + $0x78] sm:$0xff]  ;;  %v29_v22 = vld [vmem:[%s3154_s2 + $0x60] sm:$0xff]  ;;  %v31_v23 = vld [vmem:[%s3154_s2 + $0x70] sm:$0xff] }
   0xc   :  { %2216 = vmatmul.mubr.msk.f32.gmra.mrb[2].mxu0 %vm46_vm1, %v2634_v25  ;;  %2224 = vmatmul.mubr.msk.f32.gmra.mrb[2].mxu1 %vm46_vm1, %v2637_v26  ;;  %v2727_v49 = vsel %vm249_vm0, %v1633_v39, %v1635_v42  ;;  %v2743_v53 = vsel %vm249_vm0, %v1635_v42, %v2714_v46  ;;  %v2051_v60 = vrot.slane %v2674_v33, 2  ;;  %v2759_v61 = vsel %vm749_vm2, %v1841_v50, %v1842_v54  ;;  %v34_v32 = vld [vmem:[%s3154_s2 + $0x88] sm:$0xff]  ;;  %v36_v37 = vld [vmem:[%s3154_s2 + $0x98] sm:$0xff] }
   0xd   :  { %135 = vmatprep.mubr.f32.mxu0 %v2520_v3  ;;  %341 = vmatprep.mubr.f32.mxu1 %v2520_v3  ;;  %v2762_v62 = vsel %vm749_vm2, %v1842_v54, %v1844_v55  ;;  %v2776_v1 = vsel %vm749_vm2, %v1844_v55, %v2754_v58  ;;  %v2780_v2 = vpack.c.bf16 %v27_v57, %v25_v56  ;;  %v2053_v6 = vrot.slane %v2698_v40, 2  ;;  %v35_v57 = vld [vmem:[%s3154_s2 + $0x90] sm:$0xff] }
   0xe   :  { %v2782_v5 = vpack.c.bf16 %v32_v0, %v30_v63  ;;  %v2786_v8 = vsel %vm749_vm2, %v2050_v59, %v2051_v60  ;;  %v2055_v12 = vrot.slane %v2705_v43, 2  ;;  %v541_v20 = vrot.slane %v2634_v25, 1 }
   0xf   :  { %v2800_v13 = vsel %vm749_vm2, %v2051_v60, %v2053_v6  ;;  %v543_v38 = vrot.slane %v2686_v35, 1  ;;  %v2841_v41 = vpack.c.bf16 %v31_v23, %v29_v22  ;;  %v2843_v42 = vpack.c.bf16 %v36_v37, %v34_v32 }
  0x10   :  { %2217 = vmatmul.mubr.msk.f32.gmra.mrb[4].mxu0 %vm46_vm1, %v2686_v35  ;;  %2225 = vmatmul.mubr.msk.f32.gmra.mrb[4].mxu1 %vm46_vm1, %v2690_v36  ;;  %v2811_v14 = vsel %vm749_vm2, %v2053_v6, %v2055_v12  ;;  %v542_v39 = vsel %vm249_vm0, %v540_v15, %v541_v20  ;;  %v545_v50 = vrot.slane %v2735_v51, 1  ;;  %v750_v55 = vrot.slane %v2573_v9, 2 }
  0x11   :  { %141 = vmatprep.mubr.f32.mxu0 %v2520_v3  ;;  %347 = vmatprep.mubr.f32.mxu1 %v2520_v3  ;;  %v544_v54 = vsel %vm249_vm0, %v541_v20, %v543_v38  ;;  %v751_v56 = vrot.slane %v2578_v10, 2  ;;  %v755_v59 = vrot.slane %v2615_v21, 2  ;;  %v960_v60 = vrot.slane %v2634_v25, 2 }
  0x14   :  { %2218 = vmatmul.mubr.msk.f32.gmra.mrb[6].mxu0 %vm46_vm1, %v2735_v51  ;;  %2226 = vmatmul.mubr.msk.f32.gmra.mrb[6].mxu1 %vm46_vm1, %v2640_v27 }
  0x15   :  { %224 = vmatprep.mubr.f32.mxu0 %v2520_v3  ;;  %418 = vmatprep.mubr.f32.mxu1 %v2520_v3 }
  0x18   :  { %2219 = vmatmul.mubr.msk.f32.vlgmr.msra.gmra.mrb[0].mxu0 %vm46_vm1, %v2573_v9  ;;  %2227 = vmatmul.mubr.msk.f32.vlgmr.msra.gmra.mrb[0].mxu1 %vm46_vm1, %v2597_v16  ;;  %v752_v9 = vsel %vm749_vm2, %v750_v55, %v751_v56 }
  0x19   :  { %2330 = vmatpush1.bf16.msra.mxu0 %v2780_v2  ;;  %2334 = vmatpush1.bf16.msra.mxu1 %v2780_v2 }
  0x1a   :  { %230 = vmatprep.mubr.f32.mxu0 %v2520_v3  ;;  %424 = vmatprep.mubr.f32.mxu1 %v2520_v3 }
  0x1b   :  { %2336 = vmatprep.subr.bf16.mxu0 %v2782_v5  ;;  %2340 = vmatprep.subr.bf16.mxu1 %v2782_v5 }
  0x1c   :  { %2220 = vmatmul.mubr.msk.f32.gmra.mrb[2].mxu0 %vm46_vm1, %v2578_v10  ;;  %2228 = vmatmul.mubr.msk.f32.gmra.mrb[2].mxu1 %vm46_vm1, %v2634_v25 }
  0x1d   :  { %236 = vmatprep.mubr.f32.mxu0 %v2520_v3  ;;  %430 = vmatprep.mubr.f32.mxu1 %v2520_v3 }
  0x20   :  { %2221 = vmatmul.mubr.msk.f32.gmra.mrb[4].mxu0 %vm46_vm1, %v2604_v18  ;;  %2229 = vmatmul.mubr.msk.f32.gmra.mrb[4].mxu1 %vm46_vm1, %v2686_v35 }
  0x21   :  { %242 = vmatprep.mubr.f32.mxu0 %v2520_v3  ;;  %436 = vmatprep.mubr.f32.mxu1 %v2520_v3 }
  0x24   :  { %2222 = vmatmul.mubr.msk.f32.gmra.mrb[6].mxu0 %vm46_vm1, %v2615_v21  ;;  %2230 = vmatmul.mubr.msk.f32.gmra.mrb[6].mxu1 %vm46_vm1, %v2735_v51  ;;  %v959_v21 = vrot.slane %v2597_v16, 2  ;;  %v964_v16 = vrot.slane %v2735_v51, 2 }
  0x25   :  { %507 = vmatprep.mubr.f32.mxu0 %v2520_v3  ;;  %619 = vmatprep.mubr.f32.mxu1 %v2520_v3 }
  0x26   :  { %v961_v63 = vsel %vm749_vm2, %v959_v21, %v960_v60 }
  0x28   :  { %2231 = vmatmul.mubr.msk.f32.vlgmr.msra.gmra.mrb[0].mxu0 %vm46_vm1, %v2608_v19  ;;  %2235 = vmatmul.mubr.msk.f32.vlgmr.msra.gmra.mrb[0].mxu1 %vm46_vm1, %v542_v39  ;;  %v546_v19 = vsel %vm249_vm0, %v543_v38, %v545_v50 }
  0x29   :  { %2338 = vmatpush1.bf16.msra.mxu0 %v2841_v41  ;;  %2342 = vmatpush1.bf16.msra.mxu1 %v2841_v41 }
  0x2a   :  { %513 = vmatprep.mubr.f32.mxu0 %v2520_v3  ;;  %625 = vmatprep.mubr.f32.mxu1 %v2520_v3 }
  0x2b   :  { %2344 = vmatprep.subr.bf16.mxu0 %v2843_v42  ;;  %2348 = vmatprep.subr.bf16.mxu1 %v2843_v42 }
  0x2c   :  { %2232 = vmatmul.mubr.msk.f32.gmra.mrb[2].mxu0 %vm46_vm1, %v2637_v26  ;;  %2236 = vmatmul.mubr.msk.f32.gmra.mrb[2].mxu1 %vm46_vm1, %v544_v54  ;;  %v33_v26 = vld [vmem:[%s3154_s2 + $0x80] sm:$0xff] }
  0x2d   :  { %519 = vmatprep.mubr.f32.mxu0 %v2520_v3  ;;  %631 = vmatprep.mubr.f32.mxu1 %v2520_v3  ;;  %v2881_v10 = vpack.c.bf16 %v35_v57, %v33_v26 }
  0x30   :  { %2233 = vmatmul.mubr.msk.f32.gmra.mrb[4].mxu0 %vm46_vm1, %v2690_v36  ;;  %2237 = vmatmul.mubr.msk.f32.gmra.mrb[4].mxu1 %vm46_vm1, %v546_v19  ;;  %v753_v36 = vrot.slane %v2604_v18, 2 }
  0x31   :  { %525 = vmatprep.mubr.f32.mxu0 %v2520_v3  ;;  %637 = vmatprep.mubr.f32.mxu1 %v2520_v3 }
  0x32   :  { %v756_v18 = vsel %vm749_vm2, %v753_v36, %v755_v59 }
  0x34   :  { %2234 = vmatmul.mubr.msk.f32.gmra.mrb[6].mxu0 %vm46_vm1, %v2640_v27  ;;  %2238 = vmatmul.mubr.msk.f32.gmra.mrb[6].mxu1 %vm46_vm1, %v545_v50  ;;  %v754_v27 = vsel %vm749_vm2, %v751_v56, %v753_v36 }
  0x35   :  { %716 = vmatprep.mubr.f32.mxu0 %v2520_v3  ;;  %829 = vmatprep.mubr.f32.mxu1 %v2520_v3 }
  0x38   :  { %2239 = vmatmul.mubr.msk.f32.vlgmr.msra.gmra.mrb[0].mxu0 %vm46_vm1, %v542_v39  ;;  %2243 = vmatmul.mubr.msk.f32.vlgmr.msra.gmra.mrb[0].mxu1 %vm46_vm1, %v752_v9 }
  0x39   :  { %2346 = vmatpush1.bf16.msra.mxu0 %v2881_v10  ;;  %2350 = vmatpush1.bf16.msra.mxu1 %v2881_v10 }
  0x3a   :  { %722 = vmatprep.mubr.f32.mxu0 %v2520_v3  ;;  %835 = vmatprep.mubr.f32.mxu1 %v2520_v3 }
  0x3b   :  { %2352 = vmatprep.subr.bf16.mxu0 %v2557_v4  ;;  %2360 = vmatprep.subr.bf16.mxu1 %v2557_v4  ;;  %v962_v4 = vrot.slane %v2686_v35, 2 }
  0x3c   :  { %2240 = vmatmul.mubr.msk.f32.gmra.mrb[2].mxu0 %vm46_vm1, %v544_v54  ;;  %2244 = vmatmul.mubr.msk.f32.gmra.mrb[2].mxu1 %vm46_vm1, %v754_v27 }
  0x3d   :  { %728 = vmatprep.mubr.f32.mxu0 %v2520_v3  ;;  %841 = vmatprep.mubr.f32.mxu1 %v2520_v3  ;;  %v963_v25 = vsel %vm749_vm2, %v960_v60, %v962_v4 }
  0x40   :  { %2241 = vmatmul.mubr.msk.f32.gmra.mrb[4].mxu0 %vm46_vm1, %v546_v19  ;;  %2245 = vmatmul.mubr.msk.f32.gmra.mrb[4].mxu1 %vm46_vm1, %v756_v18 }
  0x41   :  { %734 = vmatprep.mubr.f32.mxu0 %v2520_v3  ;;  %847 = vmatprep.mubr.f32.mxu1 %v2520_v3 }
  0x44   :  { %2242 = vmatmul.mubr.msk.f32.gmra.mrb[6].mxu0 %vm46_vm1, %v545_v50  ;;  %2246 = vmatmul.mubr.msk.f32.gmra.mrb[6].mxu1 %vm46_vm1, %v755_v59 }
  0x45   :  { %926 = vmatprep.mubr.f32.mxu0 %v2520_v3  ;;  %1038 = vmatprep.mubr.f32.mxu1 %v2520_v3 }
  0x48   :  { %2247 = vmatmul.mubr.msk.f32.vlgmr.msra.gmra.mrb[0].mxu0 %vm46_vm1, %v752_v9  ;;  %2251 = vmatmul.mubr.msk.f32.vlgmr.msra.gmra.mrb[0].mxu1 %vm46_vm1, %v961_v63 }
  0x49   :  { %2354 = vmatpush1.bf16.msra.mxu0 %v2565_v7  ;;  %2362 = vmatpush1.bf16.msra.mxu1 %v2565_v7  ;;  %v965_v7 = vsel %vm749_vm2, %v962_v4, %v964_v16 }
  0x4a   :  { %932 = vmatprep.mubr.f32.mxu0 %v2520_v3  ;;  %1044 = vmatprep.mubr.f32.mxu1 %v2520_v3 }
  0x4b   :  { %2356 = vmatprep.subr.bf16.mxu0 %v2582_v11  ;;  %2364 = vmatprep.subr.bf16.mxu1 %v2582_v11  ;;  %v1072_v11 = vlaneseq }
  0x4c   :  { %2248 = vmatmul.mubr.msk.f32.gmra.mrb[2].mxu0 %vm46_vm1, %v754_v27  ;;  %2252 = vmatmul.mubr.msk.f32.gmra.mrb[2].mxu1 %vm46_vm1, %v963_v25 }
  0x4d   :  { %938 = vmatprep.mubr.f32.mxu0 %v2520_v3  ;;  %1050 = vmatprep.mubr.f32.mxu1 %v2520_v3 }
  0x50   :  { %2249 = vmatmul.mubr.msk.f32.gmra.mrb[4].mxu0 %vm46_vm1, %v756_v18  ;;  %2253 = vmatmul.mubr.msk.f32.gmra.mrb[4].mxu1 %vm46_vm1, %v965_v7 }
  0x51   :  { %944 = vmatprep.mubr.f32.mxu0 %v2520_v3  ;;  %1056 = vmatprep.mubr.f32.mxu1 %v2520_v3 }
  0x54   :  { %2250 = vmatmul.mubr.msk.f32.gmra.mrb[6].mxu0 %vm46_vm1, %v755_v59  ;;  %2254 = vmatmul.mubr.msk.f32.gmra.mrb[6].mxu1 %vm46_vm1, %v964_v16 }
  0x55   :  { %1216 = vmatprep.mubr.f32.mxu0 %v2520_v3  ;;  %1421 = vmatprep.mubr.f32.mxu1 %v2520_v3 }
  0x58   :  { %2263 = vmatmul.mubr.msk.f32.vlgmr.msra.gmra.mrb[8].mxu0 %vm46_vm1, %v2654_v29  ;;  %2271 = vmatmul.mubr.msk.f32.vlgmr.msra.gmra.mrb[8].mxu1 %vm46_vm1, %v2708_v44 }
  0x59   :  { %2358 = vmatpush1.bf16.msra.mxu0 %v2599_v17  ;;  %2366 = vmatpush1.bf16.msra.mxu1 %v2599_v17  ;;  %v1073_v17 = vshrl.u32 %v1072_v11, 7 }
  0x5a   :  { %1222 = vmatprep.mubr.f32.mxu0 %v2520_v3  ;;  %1427 = vmatprep.mubr.f32.mxu1 %v2520_v3 }
  0x5b   :  { %2368 = vmatprep.subr.bf16.mxu0 %v2623_v24  ;;  %2372 = vmatprep.subr.bf16.mxu1 %v2623_v24  ;;  %v1074_v24 = vsub.s32 0, %v1073_v17 }
  0x5c   :  { %2264 = vmatmul.mubr.msk.f32.gmra.mrb[10].mxu0 %vm46_vm1, %v2674_v33  ;;  %2272 = vmatmul.mubr.msk.f32.gmra.mrb[10].mxu1 %vm46_vm1, %v2721_v47 }
  0x5d   :  { %1228 = vmatprep.mubr.f32.mxu0 %v2520_v3  ;;  %1433 = vmatprep.mubr.f32.mxu1 %v2520_v3 }
  0x60   :  { %2265 = vmatmul.mubr.msk.f32.gmra.mrb[12].mxu0 %vm46_vm1, %v2698_v40  ;;  %2273 = vmatmul.mubr.msk.f32.gmra.mrb[12].mxu1 %vm46_vm1, %v2739_v52 }
  0x61   :  { %1234 = vmatprep.mubr.f32.mxu0 %v2520_v3  ;;  %1439 = vmatprep.mubr.f32.mxu1 %v2520_v3 }
  0x64   :  { %2266 = vmatmul.mubr.msk.f32.gmra.mrb[14].mxu0 %vm46_vm1, %v2705_v43  ;;  %2274 = vmatmul.mubr.msk.f32.gmra.mrb[14].mxu1 %vm46_vm1, %v2711_v45 }
  0x65   :  { %1317 = vmatprep.mubr.f32.mxu0 %v2520_v3  ;;  %1510 = vmatprep.mubr.f32.mxu1 %v2520_v3 }
  0x68   :  { %2267 = vmatmul.mubr.msk.f32.vlgmr.msra.gmra.mrb[8].mxu0 %vm46_vm1, %v2647_v28  ;;  %2275 = vmatmul.mubr.msk.f32.vlgmr.msra.gmra.mrb[8].mxu1 %vm46_vm1, %v2654_v29  ;;  %v37_v28 = vld [vmem:[%s3157_s3] sm:$0x3]  ;;  %v1078_v29 = vsub.s32 1, %v1073_v17 }
  0x69   :  { %2370 = vmatpush1.bf16.msra.mxu0 %v2780_v2  ;;  %2374 = vmatpush1.bf16.msra.mxu1 %v2780_v2 }
  0x6a   :  { %1323 = vmatprep.mubr.f32.mxu0 %v2520_v3  ;;  %1516 = vmatprep.mubr.f32.mxu1 %v2520_v3 }
  0x6b   :  { %2376 = vmatprep.subr.bf16.mxu0 %v2782_v5  ;;  %2380 = vmatprep.subr.bf16.mxu1 %v2782_v5 }
  0x6c   :  { %2268 = vmatmul.mubr.msk.f32.gmra.mrb[10].mxu0 %vm46_vm1, %v2659_v30  ;;  %2276 = vmatmul.mubr.msk.f32.gmra.mrb[10].mxu1 %vm46_vm1, %v2674_v33  ;;  %v3070_v30 = vrot.slane %v37_v28, %v1074_v24 }
  0x6d   :  { %1329 = vmatprep.mubr.f32.mxu0 %v2520_v3  ;;  %1522 = vmatprep.mubr.f32.mxu1 %v2520_v3 }
  0x70   :  { %2269 = vmatmul.mubr.msk.f32.gmra.mrb[12].mxu0 %vm46_vm1, %v2664_v31  ;;  %2277 = vmatmul.mubr.msk.f32.gmra.mrb[12].mxu1 %vm46_vm1, %v2698_v40  ;;  %v3072_v31 = vrot.slane %v37_v28, %v1078_v29 }
  0x71   :  { %1335 = vmatprep.mubr.f32.mxu0 %v2520_v3  ;;  %1528 = vmatprep.mubr.f32.mxu1 %v2520_v3 }
  0x74   :  { %2270 = vmatmul.mubr.msk.f32.gmra.mrb[14].mxu0 %vm46_vm1, %v2679_v34  ;;  %2278 = vmatmul.mubr.msk.f32.gmra.mrb[14].mxu1 %vm46_vm1, %v2705_v43 }
  0x75   :  { %1599 = vmatprep.mubr.f32.mxu0 %v2520_v3  ;;  %1711 = vmatprep.mubr.f32.mxu1 %v2520_v3 }
  0x78   :  { %2279 = vmatmul.mubr.msk.f32.vlgmr.msra.gmra.mrb[8].mxu0 %vm46_vm1, %v2708_v44  ;;  %2283 = vmatmul.mubr.msk.f32.vlgmr.msra.gmra.mrb[8].mxu1 %vm46_vm1, %v2724_v48 }
  0x79   :  { %2378 = vmatpush1.bf16.msra.mxu0 %v2841_v41  ;;  %2382 = vmatpush1.bf16.msra.mxu1 %v2841_v41 }
  0x7a   :  { %1605 = vmatprep.mubr.f32.mxu0 %v2520_v3  ;;  %1717 = vmatprep.mubr.f32.mxu1 %v2520_v3 }
  0x7b   :  { %2384 = vmatprep.subr.bf16.mxu0 %v2843_v42  ;;  %2388 = vmatprep.subr.bf16.mxu1 %v2843_v42 }
  0x7c   :  { %2280 = vmatmul.mubr.msk.f32.gmra.mrb[10].mxu0 %vm46_vm1, %v2721_v47  ;;  %2284 = vmatmul.mubr.msk.f32.gmra.mrb[10].mxu1 %vm46_vm1, %v2727_v49 }
  0x7d   :  { %1611 = vmatprep.mubr.f32.mxu0 %v2520_v3  ;;  %1723 = vmatprep.mubr.f32.mxu1 %v2520_v3 }
  0x80   :  { %2281 = vmatmul.mubr.msk.f32.gmra.mrb[12].mxu0 %vm46_vm1, %v2739_v52  ;;  %2285 = vmatmul.mubr.msk.f32.gmra.mrb[12].mxu1 %vm46_vm1, %v2743_v53 }
  0x81   :  { %1617 = vmatprep.mubr.f32.mxu0 %v2520_v3  ;;  %1729 = vmatprep.mubr.f32.mxu1 %v2520_v3 }
  0x84   :  { %2282 = vmatmul.mubr.msk.f32.gmra.mrb[14].mxu0 %vm46_vm1, %v2711_v45  ;;  %2286 = vmatmul.mubr.msk.f32.gmra.mrb[14].mxu1 %vm46_vm1, %v2714_v46 }
  0x85   :  { %1808 = vmatprep.mubr.f32.mxu0 %v2520_v3  ;;  %1920 = vmatprep.mubr.f32.mxu1 %v2520_v3 }
  0x88   :  { %2287 = vmatmul.mubr.msk.f32.vlgmr.msra.gmra.mrb[8].mxu0 %vm46_vm1, %v2724_v48  ;;  %2291 = vmatmul.mubr.msk.f32.vlgmr.msra.gmra.mrb[8].mxu1 %vm46_vm1, %v2759_v61 }
  0x89   :  { %2386 = vmatpush1.bf16.msra.mxu0 %v2881_v10  ;;  %2390 = vmatpush1.bf16.msra.mxu1 %v2881_v10 }
  0x8a   :  { %1814 = vmatprep.mubr.f32.mxu0 %v2520_v3  ;;  %1926 = vmatprep.mubr.f32.mxu1 %v2520_v3 }
  0x8c   :  { %2288 = vmatmul.mubr.msk.f32.gmra.mrb[10].mxu0 %vm46_vm1, %v2727_v49  ;;  %2292 = vmatmul.mubr.msk.f32.gmra.mrb[10].mxu1 %vm46_vm1, %v2762_v62 }
  0x8d   :  { %1820 = vmatprep.mubr.f32.mxu0 %v2520_v3  ;;  %1932 = vmatprep.mubr.f32.mxu1 %v2520_v3 }
  0x90   :  { %2289 = vmatmul.mubr.msk.f32.gmra.mrb[12].mxu0 %vm46_vm1, %v2743_v53  ;;  %2293 = vmatmul.mubr.msk.f32.gmra.mrb[12].mxu1 %vm46_vm1, %v2776_v1 }
  0x91   :  { %1826 = vmatprep.mubr.f32.mxu0 %v2520_v3  ;;  %1938 = vmatprep.mubr.f32.mxu1 %v2520_v3 }
  0x94   :  { %2290 = vmatmul.mubr.msk.f32.gmra.mrb[14].mxu0 %vm46_vm1, %v2714_v46  ;;  %2294 = vmatmul.mubr.msk.f32.gmra.mrb[14].mxu1 %vm46_vm1, %v2754_v58 }
  0x95   :  { %2017 = vmatprep.mubr.f32.mxu0 %v2520_v3  ;;  %2129 = vmatprep.mubr.f32.mxu1 %v2520_v3 }
  0x98   :  { %2295 = vmatmul.mubr.msk.f32.vlgmr.msra.gmra.mrb[8].mxu0 %vm46_vm1, %v2759_v61  ;;  %2299 = vmatmul.mubr.msk.f32.vlgmr.msra.gmra.mrb[8].mxu1 %vm46_vm1, %v2786_v8 }
  0x99   :  { %2023 = vmatprep.mubr.f32.mxu0 %v2520_v3  ;;  %2135 = vmatprep.mubr.f32.mxu1 %v2520_v3 }
  0x9c   :  { %2296 = vmatmul.mubr.msk.f32.gmra.mrb[10].mxu0 %vm46_vm1, %v2762_v62  ;;  %2300 = vmatmul.mubr.msk.f32.gmra.mrb[10].mxu1 %vm46_vm1, %v2800_v13 }
  0x9d   :  { %2029 = vmatprep.mubr.f32.mxu0 %v2520_v3  ;;  %2141 = vmatprep.mubr.f32.mxu1 %v2520_v3 }
  0xa0   :  { %2297 = vmatmul.mubr.msk.f32.gmra.mrb[12].mxu0 %vm46_vm1, %v2776_v1  ;;  %2301 = vmatmul.mubr.msk.f32.gmra.mrb[12].mxu1 %vm46_vm1, %v2811_v14 }
  0xa1   :  { %2035 = vmatprep.mubr.f32.mxu0 %v2520_v3  ;;  %2147 = vmatprep.mubr.f32.mxu1 %v2520_v3 }
  0xa4   :  { %2298 = vmatmul.mubr.msk.f32.gmra.mrb[14].mxu0 %vm46_vm1, %v2754_v58  ;;  %2302 = vmatmul.mubr.msk.f32.gmra.mrb[14].mxu1 %vm46_vm1, %v2055_v12 }
 0x11b   :  { %v928_v3 = vpop.f32.mrb[0].mxu0  ;;  %v1040_v33 = vpop.f32.mrb[0].mxu1 }
 0x11c   :  { %v1082_v34 = vadd.f32 %v3070_v30, %v928_v3  ;;  %v1098_v35 = vadd.f32 %v3070_v30, %v1040_v33  ;;  %v930_v40 = vpop.f32.mrb[1].mxu0  ;;  %v1042_v43 = vpop.f32.mrb[1].mxu1 }
 0x11d   :  { %v1083_v44 = vadd.f32 %v3072_v31, %v930_v40  ;;  %v1099_v45 = vadd.f32 %v3072_v31, %v1042_v43 }
 0x11e   :  { %v1090_v46 = vmax.f32 %v1082_v34, 0.0  ;;  %v1106_v47 = vmax.f32 %v1098_v35, 0.0 }
 0x11f   :  { %v1091_v48 = vmax.f32 %v1083_v44, 0.0  ;;  %v1107_v49 = vmax.f32 %v1099_v45, 0.0  ;;  %v934_v51 = vpop.f32.mrb[2].mxu0  ;;  %v1046_v52 = vpop.f32.mrb[2].mxu1 }
 0x120   :  { %v1114_v53 = vmax.f32 %v1090_v46, %v1106_v47  ;;  %v1084_v58 = vadd.f32 %v3070_v30, %v934_v51  ;;  %v1100_v61 = vadd.f32 %v3070_v30, %v1046_v52  ;;  %v936_v62 = vpop.f32.mrb[3].mxu0  ;;  %v1048_v0 = vpop.f32.mrb[3].mxu1 }
 0x121   :  { %v1115_v1 = vmax.f32 %v1091_v48, %v1107_v49  ;;  %v1085_v2 = vadd.f32 %v3072_v31, %v936_v62  ;;  %v1101_v5 = vadd.f32 %v3072_v31, %v1048_v0 }
 0x122   :  { %1122 = vst [vmem:[%s3158_s4] sm:$0xff] %v1114_v53  ;;  %v1092_v6 = vmax.f32 %v1084_v58, 0.0  ;;  %v1108_v8 = vmax.f32 %v1100_v61, 0.0 }
 0x123   :  { %1123 = vst [vmem:[%s3158_s4 + $0x8] sm:$0xff] %v1115_v1  ;;  %v1093_v12 = vmax.f32 %v1085_v2, 0.0  ;;  %v1109_v13 = vmax.f32 %v1101_v5, 0.0  ;;  %v940_v14 = vpop.f32.mrb[4].mxu0  ;;  %v1052_v15 = vpop.f32.mrb[4].mxu1 }
 0x124   :  { %v1116_v20 = vmax.f32 %v1092_v6, %v1108_v8  ;;  %v1086_v22 = vadd.f32 %v3070_v30, %v940_v14  ;;  %v1102_v23 = vadd.f32 %v3070_v30, %v1052_v15  ;;  %v942_v32 = vpop.f32.mrb[5].mxu0  ;;  %v1054_v37 = vpop.f32.mrb[5].mxu1 }
 0x125   :  { %v1117_v38 = vmax.f32 %v1093_v12, %v1109_v13  ;;  %v1087_v39 = vadd.f32 %v3072_v31, %v942_v32  ;;  %v1103_v41 = vadd.f32 %v3072_v31, %v1054_v37 }
 0x126   :  { %1124 = vst [vmem:[%s3158_s4 + $0x10] sm:$0xff] %v1116_v20  ;;  %v1094_v42 = vmax.f32 %v1086_v22, 0.0  ;;  %v1110_v50 = vmax.f32 %v1102_v23, 0.0 }
 0x127   :  { %1125 = vst [vmem:[%s3158_s4 + $0x18] sm:$0xff] %v1117_v38  ;;  %v1095_v54 = vmax.f32 %v1087_v39, 0.0  ;;  %v1111_v19 = vmax.f32 %v1103_v41, 0.0  ;;  %v946_v55 = vpop.f32.mrb[6].mxu0  ;;  %v1058_v56 = vpop.f32.mrb[6].mxu1 }
 0x128   :  { %v1118_v26 = vmax.f32 %v1094_v42, %v1110_v50  ;;  %v1088_v57 = vadd.f32 %v3070_v30, %v946_v55  ;;  %v1104_v9 = vadd.f32 %v3070_v30, %v1058_v56  ;;  %v948_v10 = vpop.f32.mrb[7].mxu0  ;;  %v1060_v36 = vpop.f32.mrb[7].mxu1 }
 0x129   :  { %v1119_v27 = vmax.f32 %v1095_v54, %v1111_v19  ;;  %v1089_v59 = vadd.f32 %v3072_v31, %v948_v10  ;;  %v1105_v18 = vadd.f32 %v3072_v31, %v1060_v36 }
 0x12a   :  { %1126 = vst [vmem:[%s3158_s4 + $0x20] sm:$0xff] %v1118_v26  ;;  %v1096_v21 = vmax.f32 %v1088_v57, 0.0  ;;  %v1112_v60 = vmax.f32 %v1104_v9, 0.0 }
 0x12b   :  { %1127 = vst [vmem:[%s3158_s4 + $0x28] sm:$0xff] %v1119_v27  ;;  %v1097_v4 = vmax.f32 %v1089_v59, 0.0  ;;  %v1113_v63 = vmax.f32 %v1105_v18, 0.0 }
 0x12c   :  { %v1120_v16 = vmax.f32 %v1096_v21, %v1112_v60 }
 0x12d   :  { %v1121_v25 = vmax.f32 %v1097_v4, %v1113_v63 }
 0x12e   :  { %1128 = vst [vmem:[%s3158_s4 + $0x30] sm:$0x3f] %v1120_v16 }
 0x12f   :  { %1129 = vst [vmem:[%s3158_s4 + $0x38] sm:$0x3f] %v1121_v25 }
 0x16b   :  { %v2019_v7 = vpop.f32.mrb[8].mxu0  ;;  %v2131_v11 = vpop.f32.mrb[8].mxu1 }
 0x16c   :  { %v2162_v17 = vadd.f32 %v2019_v7, %v3070_v30  ;;  %v2178_v24 = vadd.f32 %v2131_v11, %v3070_v30  ;;  %v2021_v28 = vpop.f32.mrb[9].mxu0  ;;  %v2133_v29 = vpop.f32.mrb[9].mxu1 }
 0x16d   :  { %v2163_v3 = vadd.f32 %v2021_v28, %v3072_v31  ;;  %v2179_v33 = vadd.f32 %v2133_v29, %v3072_v31 }
 0x16e   :  { %v2170_v34 = vmax.f32 %v2162_v17, 0.0  ;;  %v2186_v35 = vmax.f32 %v2178_v24, 0.0 }
 0x16f   :  { %v2171_v40 = vmax.f32 %v2163_v3, 0.0  ;;  %v2187_v43 = vmax.f32 %v2179_v33, 0.0  ;;  %v2025_v44 = vpop.f32.mrb[10].mxu0  ;;  %v2137_v45 = vpop.f32.mrb[10].mxu1 }
 0x170   :  { %v2194_v46 = vmax.f32 %v2170_v34, %v2186_v35  ;;  %v2164_v47 = vadd.f32 %v2025_v44, %v3070_v30  ;;  %v2180_v48 = vadd.f32 %v2137_v45, %v3070_v30  ;;  %v2027_v49 = vpop.f32.mrb[11].mxu0  ;;  %v2139_v51 = vpop.f32.mrb[11].mxu1 }
 0x171   :  { %v2195_v52 = vmax.f32 %v2171_v40, %v2187_v43  ;;  %v2165_v53 = vadd.f32 %v2027_v49, %v3072_v31  ;;  %v2181_v58 = vadd.f32 %v2139_v51, %v3072_v31 }
 0x172   :  { %2303 = vst [vmem:[%s3158_s4 + $0x40] sm:$0xff] %v2194_v46  ;;  %v2172_v61 = vmax.f32 %v2164_v47, 0.0  ;;  %v2188_v62 = vmax.f32 %v2180_v48, 0.0 }
 0x173   :  { %2304 = vst [vmem:[%s3158_s4 + $0x48] sm:$0xff] %v2195_v52  ;;  %v2173_v0 = vmax.f32 %v2165_v53, 0.0  ;;  %v2189_v1 = vmax.f32 %v2181_v58, 0.0  ;;  %v2031_v2 = vpop.f32.mrb[12].mxu0  ;;  %v2143_v5 = vpop.f32.mrb[12].mxu1 }
 0x174   :  { %v2196_v6 = vmax.f32 %v2172_v61, %v2188_v62  ;;  %v2166_v8 = vadd.f32 %v2031_v2, %v3070_v30  ;;  %v2182_v12 = vadd.f32 %v2143_v5, %v3070_v30  ;;  %v2033_v13 = vpop.f32.mrb[13].mxu0  ;;  %v2145_v14 = vpop.f32.mrb[13].mxu1 }
 0x175   :  { %v2197_v15 = vmax.f32 %v2173_v0, %v2189_v1  ;;  %v2167_v20 = vadd.f32 %v2033_v13, %v3072_v31  ;;  %v2183_v22 = vadd.f32 %v2145_v14, %v3072_v31 }
 0x176   :  { %2305 = vst [vmem:[%s3158_s4 + $0x50] sm:$0xff] %v2196_v6  ;;  %v2174_v23 = vmax.f32 %v2166_v8, 0.0  ;;  %v2190_v32 = vmax.f32 %v2182_v12, 0.0 }
 0x177   :  { %2306 = vst [vmem:[%s3158_s4 + $0x58] sm:$0xff] %v2197_v15  ;;  %v2175_v37 = vmax.f32 %v2167_v20, 0.0  ;;  %v2191_v38 = vmax.f32 %v2183_v22, 0.0  ;;  %v2037_v39 = vpop.f32.mrb[14].mxu0  ;;  %v2149_v41 = vpop.f32.mrb[14].mxu1 }
 0x178   :  { %v2198_v42 = vmax.f32 %v2174_v23, %v2190_v32  ;;  %v2168_v50 = vadd.f32 %v2037_v39, %v3070_v30  ;;  %v2184_v54 = vadd.f32 %v2149_v41, %v3070_v30  ;;  %v2039_v19 = vpop.f32.mrb[15].mxu0  ;;  %v2151_v55 = vpop.f32.mrb[15].mxu1 }
 0x179   :  { %v2199_v56 = vmax.f32 %v2175_v37, %v2191_v38  ;;  %v2169_v26 = vadd.f32 %v2039_v19, %v3072_v31  ;;  %v2185_v57 = vadd.f32 %v2151_v55, %v3072_v31 }
 0x17a   :  { %2307 = vst [vmem:[%s3158_s4 + $0x60] sm:$0xff] %v2198_v42  ;;  %v2176_v9 = vmax.f32 %v2168_v50, 0.0  ;;  %v2192_v10 = vmax.f32 %v2184_v54, 0.0 }
 0x17b   :  { %2308 = vst [vmem:[%s3158_s4 + $0x68] sm:$0xff] %v2199_v56  ;;  %v2177_v36 = vmax.f32 %v2169_v26, 0.0  ;;  %v2193_v27 = vmax.f32 %v2185_v57, 0.0 }
 0x17c   :  { %v2200_v30 = vmax.f32 %v2176_v9, %v2192_v10 }
 0x17d   :  { %v2201_v59 = vmax.f32 %v2177_v36, %v2193_v27 }
 0x17e   :  { %2309 = vst [vmem:[%s3158_s4 + $0x70] sm:$0x3f] %v2200_v30 }
 0x17f   :  { %2310 = vst [vmem:[%s3158_s4 + $0x78] sm:$0x3f] %v2201_v59 }

</bundles_post_ra>
